<compile_context>
chip_gen: v7x
topology: tpu7x:2x2x1
jax: 0.10.0
libtpu: 0.0.40
codegen_flags: <defaults>
</compile_context>

<pallas_src>
import jax
import jax.numpy as jnp
from jax.experimental import pallas as pl
from jax.experimental.pallas import tpu as pltpu


def _cdiv(a, b):
    return -(-a // b)


def _round_up(x, m):
    return (x + m - 1) // m * m


def _sublane_align(dtype):
    # min sublane multiple for packed dtypes: f32 -> 8, bf16/f16 -> 16, 8-bit -> 32
    return {4: 8, 2: 16, 1: 32}.get(jnp.dtype(dtype).itemsize, 8)


def _tpu_kind():
    try:
        d = jax.devices()[0]
        if d.platform == "tpu":
            return d.device_kind.lower()
    except Exception:
        pass
    return ""


def _default_n_split():
    kind = _tpu_kind()
    # Only v7x has 2 TensorCores per chip; v5e/v6e get a plain sequential loop from
    # a leading split, so keep it at 1 there.
    return 2 if ("v7" in kind or "7x" in kind) else 1


def _vmem_input_budget():
    kind = _tpu_kind()
    if "v5" in kind:          # v5e: 16 MiB scoped default (we raise it, stay modest)
        return 10 * 1024 * 1024
    if "v7" in kind or "7x" in kind:   # v7x: only 64 MiB physical VMEM
        return 10 * 1024 * 1024
    return 14 * 1024 * 1024   # v6e and default: 32 MiB scoped / 128 MiB physical


def _make_kernel(tb, steps, islab, n_inner, cp, b_rows, need_mask):
    fold8 = (islab % 8 == 0)

    def kernel(yp_ref, yt_ref, out_ref):
        c = pl.program_id(0)
        i = pl.program_id(1)
        tile_row0 = (c * steps + i) * tb

        @pl.when(i == 0)
        def _():
            out_ref[...] = jnp.zeros_like(out_ref)

        def slab(r0, masked):
            x = yp_ref[pl.ds(r0, islab), :].astype(jnp.float32)
            y = yt_ref[pl.ds(r0, islab), :].astype(jnp.float32)
            # numerically stable BCE-with-logits (PyTorch form)
            per = jnp.maximum(x, 0.0) - x * y + jnp.log1p(jnp.exp(-jnp.abs(x)))
            if masked:
                rows = (tile_row0 + r0
                        + jax.lax.broadcasted_iota(jnp.int32, per.shape, 0))
                per = jnp.where(rows < b_rows, per, 0.0)
            if fold8:
                # fold (islab, cp) -> (8, cp): pure VPU adds, no cross-lane reduce
                out_ref[0] += per.reshape(islab // 8, 8, cp).sum(axis=0)
            else:
                # degenerate tiny-batch path (islab < 8 rows)
                out_ref[0, 0:1, :] += per.sum(axis=0, keepdims=True)

        def accumulate(masked):
            if n_inner == 1:
                slab(0, masked)
            else:
                def body(j, carry):
                    slab(pl.multiple_of(j * islab, islab), masked)
                    return carry
                jax.lax.fori_loop(0, n_inner, body, 0, unroll=(n_inner <= 8))

        if need_mask:
            ragged = tile_row0 + tb > b_rows
            pl.when(ragged)(lambda: accumulate(True))
            pl.when(jnp.logical_not(ragged))(lambda: accumulate(False))
        else:
            accumulate(False)

    return kernel


def bce_loss_multiclass(y_pred, y_true, weights, *, tile_rows=1024, n_split=None):
    """Mean weighted BCE-with-logits over (B, C) logits (PyTorch BCELossMulticlass)."""
    B, C = y_pred.shape
    assert y_true.shape == (B, C)
    weights = jnp.asarray(weights)
    assert weights.shape[-1] == C
    w = weights.reshape(-1).astype(jnp.float32)

    if n_split is None:
        n_split = _default_n_split()

    row_align = max(_sublane_align(y_pred.dtype), _sublane_align(y_true.dtype), 8)

    # Lane-dense repack when C < 128: (B, C) -> (B/k, k*C). Free for contiguous data.
    k = 1
    if C < 128:
        kmax = min(max(1, 128 // C), max(1, B // row_align))
        for cand in range(kmax, 0, -1):
            if B % cand == 0:
                k = cand
                break
    b_rows, cp = B // k, C * k
    yp = y_pred.reshape(b_rows, cp)
    yt = y_true.reshape(b_rows, cp)
    if k > 1:
        w = jnp.tile(w, k)

    cp_lanes = _round_up(cp, 128)

    # Inner slab rows: keep each f32 elementwise temporary under ~512 KiB.
    islab = min(128, max(row_align,
                         ((512 * 1024) // (4 * cp_lanes)) // row_align * row_align))

    # Tile rows from actual input itemsizes (2 inputs x 2 pipeline buffers).
    input_budget = _vmem_input_budget()
    bytes_per_row = 2 * (yp.dtype.itemsize + yt.dtype.itemsize) * cp_lanes
    tb_budget = max(row_align,
                    (input_budget // bytes_per_row) // row_align * row_align)

    b_max_tile = (b_rows // row_align) * row_align
    if b_max_tile == 0:
        tb = b_rows          # tiny batch: single block equal to the full row dim
        islab = tb
    else:
        tb = max(row_align,
                 min(tile_rows, tb_budget, b_max_tile) // row_align * row_align)
        if tb >= islab:
            tb = (tb // islab) * islab
        else:
            islab = tb
    n_inner = max(1, tb // islab)

    n_tiles = _cdiv(b_rows, tb)
    n_split = max(1, min(n_split, n_tiles))
    steps = _cdiv(n_tiles, n_split)
    covered = n_split * steps * tb
    need_mask = covered != b_rows

    # Explicit scoped-VMEM limit sized to actual footprint (inputs + temps + output).
    est = (bytes_per_row * tb
           + 8 * islab * cp_lanes * 4
           + 4 * 8 * cp_lanes * 4)
    vmem_limit = int(min(max(2 * est, 16 * 1024 * 1024), 32 * 1024 * 1024))

    kernel = _make_kernel(tb, steps, islab, n_inner, cp, b_rows, need_mask)

    last_blk = n_tiles - 1

    def row_map(c, i):
        # Clamp so a (possibly) overshooting grid step maps to the last real block;
        # its contribution is zeroed by the in-kernel row mask.
        return (jnp.minimum(c * steps + i, last_blk), 0)

    partials = pl.pallas_call(
        kernel,
        out_shape=jax.ShapeDtypeStruct((n_split, 8, cp), jnp.float32),
        grid=(n_split, steps),
        in_specs=[
            pl.BlockSpec((tb, cp), row_map),    # y_pred rows
            pl.BlockSpec((tb, cp), row_map),    # y_true rows
        ],
        out_specs=pl.BlockSpec((1, 8, cp), lambda c, i: (c, 0, 0)),
        compiler_params=pltpu.CompilerParams(
            dimension_semantics=("parallel", "arbitrary"),
            vmem_limit_bytes=vmem_limit),
    )(yp, yt)

    # Per-class weight + mean applied on the tiny (n_split, 8, cp) partial slab.
    col_sums = jnp.sum(partials, axis=(0, 1))        # (cp,)
    return jnp.sum(col_sums * w) * (1.0 / float(B * C))


if __name__ == "__main__":
    key = jax.random.PRNGKey(0)

    def reference(y_pred, y_true, weights):
        x = y_pred.astype(jnp.float32)
        y = y_true.astype(jnp.float32)
        wv = weights.astype(jnp.float32)[None, :]
        per = jnp.maximum(x, 0.0) - x * y + jnp.log1p(jnp.exp(-jnp.abs(x)))
        return jnp.mean(wv * per)

    cases = [
        # (B, C, input dtype)
        (8, 128, jnp.float32),      # lane-aligned, single tile
        (37, 5, jnp.float32),       # ragged rows, tiny C (37 prime -> no packing)
        (300, 33, jnp.bfloat16),    # bf16 streaming + lane packing (k=3) + ragged edge
        (1280, 256, jnp.bfloat16),  # multi-tile pipeline + inner slab loop + ragged edge
    ]

    ok = True
    for idx, (B, C, dtype) in enumerate(cases):
        k1, k2, k3 = jax.random.split(jax.random.fold_in(key, idx), 3)
        y_pred = jax.random.normal(k1, (B, C), dtype=jnp.float32).astype(dtype)
        y_true = (jax.random.uniform(k2, (B, C)) > 0.5).astype(dtype)
        weights = jax.random.uniform(
            k3, (C,), minval=0.5, maxval=1.5).astype(jnp.float32)

        loss = bce_loss_multiclass(y_pred, y_true, weights)
        jax.block_until_ready(loss)
        ref = reference(y_pred, y_true, weights)
        if not jnp.allclose(loss, ref, rtol=2e-4, atol=1e-5):
            ok = False
            print(f"case {idx} (B={B}, C={C}, {jnp.dtype(dtype).name}): "
                  f"kernel={float(loss)} ref={float(ref)}")

    if ok:
        print("KERNEL_OK")
</pallas_src>

<mosaic_0001>
module attributes {stable_mosaic.version = 11 : i64} {
  func.func @kernel(%arg0: i32, %arg1: i32, %arg2: memref<8x128xf32, #tpu.memory_space<vmem>>, %arg3: memref<8x128xf32, #tpu.memory_space<vmem>>, %arg4: memref<1x8x128xf32, #tpu.memory_space<vmem>>) attributes {dimension_semantics = [#tpu.dimension_semantics<parallel>, #tpu.dimension_semantics<arbitrary>], iteration_bounds = array<i64: 1, 1>, scalar_prefetch = 0 : i64, scratch_operands = 0 : i64, tpu.core_type = #tpu.core_type<tc>, window_params = [{transform_indices = @transform_0, window_bounds = array<i64: 8, 128>}, {transform_indices = @transform_1, window_bounds = array<i64: 8, 128>}, {transform_indices = @transform_2, window_bounds = array<i64: 1, 8, 128>}]} {
    %c0_i32 = arith.constant 0 : i32
    %0 = arith.cmpi eq, %arg1, %c0_i32 : i32
    %1 = arith.extui %0 : i1 to i32
    %c0_i32_0 = arith.constant 0 : i32
    %2 = arith.cmpi ne, %1, %c0_i32_0 : i32
    scf.if %2 {
      %cst_12 = arith.constant 0.000000e+00 : f32
      %23 = vector.broadcast %cst_12 : f32 to vector<1x8x128xf32>
      %c0_13 = arith.constant 0 : index
      %c0_14 = arith.constant 0 : index
      %c0_15 = arith.constant 0 : index
      %24 = vector.load %arg4[%c0_13, %c0_14, %c0_15] : memref<1x8x128xf32, #tpu.memory_space<vmem>>, vector<1x8x128xf32>
      tpu.vector_store %arg4[%c0_13, %c0_14, %c0_15], %23 {strides = array<i32>} : memref<1x8x128xf32, #tpu.memory_space<vmem>>, vector<1x8x128xf32>,
    } else {
    }
    %c0 = arith.constant 0 : index
    %c0_1 = arith.constant 0 : index
    %3 = vector.load %arg2[%c0, %c0_1] : memref<8x128xf32, #tpu.memory_space<vmem>>, vector<8x128xf32>
    %c0_2 = arith.constant 0 : index
    %c0_3 = arith.constant 0 : index
    %4 = vector.load %arg3[%c0_2, %c0_3] : memref<8x128xf32, #tpu.memory_space<vmem>>, vector<8x128xf32>
    %cst = arith.constant 0.000000e+00 : f32
    %5 = vector.broadcast %cst : f32 to vector<8x128xf32>
    %6 = arith.maximumf %3, %5 : vector<8x128xf32>
    %7 = arith.mulf %3, %4 : vector<8x128xf32>
    %8 = arith.subf %6, %7 : vector<8x128xf32>
    %9 = math.absf %3 : vector<8x128xf32>
    %cst_4 = arith.constant 0.000000e+00 : f32
    %10 = vector.broadcast %cst_4 : f32 to vector<8x128xf32>
    %11 = arith.subf %10, %9 : vector<8x128xf32>
    %12 = math.exp %11 : vector<8x128xf32>
    %13 = math.log1p %12 : vector<8x128xf32>
    %14 = arith.addf %8, %13 : vector<8x128xf32>
    %c0_5 = arith.constant 0 : index
    %c0_6 = arith.constant 0 : index
    %c0_7 = arith.constant 0 : index
    %15 = vector.load %arg4[%c0_5, %c0_6, %c0_7] : memref<1x8x128xf32, #tpu.memory_space<vmem>>, vector<1x8x128xf32>
    %16 = vector.shape_cast %15 : vector<1x8x128xf32> to vector<8x128xf32>
    %17 = vector.shape_cast %14 : vector<8x128xf32> to vector<1x8x128xf32>
    %cst_8 = arith.constant dense<0.000000e+00> : vector<8x128xf32>
    %18 = vector.multi_reduction <add>, %17, %cst_8 [0] : vector<1x8x128xf32> to vector<8x128xf32>
    %19 = arith.addf %16, %18 : vector<8x128xf32>
    %c0_9 = arith.constant 0 : index
    %c0_10 = arith.constant 0 : index
    %c0_11 = arith.constant 0 : index
    %20 = vector.load %arg4[%c0_9, %c0_10, %c0_11] : memref<1x8x128xf32, #tpu.memory_space<vmem>>, vector<1x8x128xf32>
    %21 = vector.shape_cast %20 : vector<1x8x128xf32> to vector<8x128xf32>
    %22 = vector.shape_cast %19 : vector<8x128xf32> to vector<1x8x128xf32>
    tpu.vector_store %arg4[%c0_9, %c0_10, %c0_11], %22 {strides = array<i32>} : memref<1x8x128xf32, #tpu.memory_space<vmem>>, vector<1x8x128xf32>,
    return
  }
  func.func @transform_0(%arg0: i32, %arg1: i32) -> (i32, i32) {
    %c1_i32 = arith.constant 1 : i32
    %0 = arith.muli %arg0, %c1_i32 : i32
    %1 = arith.addi %0, %arg1 : i32
    %c0_i32 = arith.constant 0 : i32
    %2 = arith.minsi %1, %c0_i32 : i32
    %c0_i32_0 = arith.constant 0 : i32
    %c0_i32_1 = arith.constant 0 : i32
    return %2, %c0_i32_0 : i32, i32
  }
  func.func @transform_1(%arg0: i32, %arg1: i32) -> (i32, i32) {
    %c1_i32 = arith.constant 1 : i32
    %0 = arith.muli %arg0, %c1_i32 : i32
    %1 = arith.addi %0, %arg1 : i32
    %c0_i32 = arith.constant 0 : i32
    %2 = arith.minsi %1, %c0_i32 : i32
    %c0_i32_0 = arith.constant 0 : i32
    %c0_i32_1 = arith.constant 0 : i32
    return %2, %c0_i32_0 : i32, i32
  }
  func.func @transform_2(%arg0: i32, %arg1: i32) -> (i32, i32, i32) {
    %c0_i32 = arith.constant 0 : i32
    %c0_i32_0 = arith.constant 0 : i32
    %c0_i32_1 = arith.constant 0 : i32
    return %arg0, %c0_i32, %c0_i32_0 : i32, i32, i32
  }
}

</mosaic_0001>

<bundles_post_ra>
// kernel: tpu_custom_call.1
= control target key start
LH: loop header
LB: loop body
LE: loop exit
PB: predicated region body
PF: predicated region fallthrough
CT: control target
= control target key end

     0   :  { %7 = vsyncpa [#allocation3], 0  ;;  %s234_s0 = inlined_call_operand.hbm [shape: f32[8,128], index: 0, kind: input, shape index: {}]   ;;  %s235_s1 = inlined_call_operand.hbm [shape: f32[8,128], index: 1, kind: input, shape index: {}]   ;;  %s236_s2 = inlined_call_operand.hbm [shape: f32[1,8,128], index: 2, kind: output, shape index: {}]  }
   0x1   :  { %8 = vsyncpa [#allocation6], 0 }
   0x2   :  { %9 = vsyncpa [#allocation4], 0  ;;  %s180_s9 = smov [#allocation2]   ;;  %s181_s11 = smov [#allocation5]  }
   0x3   :  { %s21_s10 = sshll.u32 %s180_s9, 4  ;;  %s36_s12 = sshll.u32 %s181_s11, 4  ;;  %s22_s10 = int_to_ptr.vmem [resolvable:$true] %s21_s10  ;;  %s37_s12 = int_to_ptr.vmem [resolvable:$true] %s36_s12 }
   0x4   :  { %s108_s15 = scalar_lea.hbm %s234_s0, 128 }
   0x5   :  { %p109_p0 = scmp.ne.s32.totalorder %s234_s0, %s108_s15  ;;  %p112_p1 = scmp.lt.u32.totalorder %s108_s15, %s234_s0 }
   0x7   :  { %p114_p2 = pnand %p112_p1, %p109_p0 }
   0x9   :  { %117 = shalt.err (!%p114_p2)
}
   0xa   :  { %s118_s20 = scalar_lea.vmem %s22_s10, 128  ;;  %p123_p4 = scmp.lt.s32.totalorder %s22_s10, %s22_s10 }
   0xb   :  { %p119_p3 = scmp.ne.s32.totalorder %s22_s10, %s118_s20  ;;  %p124_p5 = scmp.lt.s32.totalorder %s118_s20, %s118_s20 }
   0xd   :  { %p125_p6 = por %p124_p5, %p123_p4 }
   0xf   :  { %p126_p7 = pnand %p125_p6, %p119_p3 }
  0x11   :  { %129 = shalt.err (!%p126_p7)
}
  0x12   :  { %24 = dma.hbm_to_vmem [thread:$0]  %s234_s0, 128, %s22_s10, [#allocation3]  }
  0x13   :  { %s130_s25 = scalar_lea.hbm %s235_s1, 128 }
  0x14   :  { %p131_p8 = scmp.ne.s32.totalorder %s235_s1, %s130_s25  ;;  %p134_p9 = scmp.lt.u32.totalorder %s130_s25, %s235_s1 }
  0x16   :  { %p136_p10 = pnand %p134_p9, %p131_p8 }
  0x18   :  { %139 = shalt.err (!%p136_p10)
}
  0x19   :  { %s140_s30 = scalar_lea.vmem %s37_s12, 128  ;;  %p145_p12 = scmp.lt.s32.totalorder %s37_s12, %s37_s12 }
  0x1a   :  { %p141_p11 = scmp.ne.s32.totalorder %s37_s12, %s140_s30  ;;  %p146_p13 = scmp.lt.s32.totalorder %s140_s30, %s140_s30 }
  0x1c   :  { %p147_p0 = por %p146_p13, %p145_p12 }
  0x1e   :  { %p148_p1 = pnand %p147_p0, %p141_p11 }
  0x20   :  { %151 = shalt.err (!%p148_p1)
}
  0x21   :  { %39 = dma.hbm_to_vmem [thread:$0]  %s235_s1, 128, %s37_s12, [#allocation6]  }
  0x22   :  { %174 = dma.done.wait [#allocation3], 128  }
  0x23   :  { %175 = vsyncadd [#allocation3], 4294967168 }
  0x24   :  { %176 = dma.done.wait [#allocation6], 128  }
  0x25   :  { %177 = vsyncadd [#allocation6], 4294967168  ;;  %v57_v0 = vld [vmem:[#allocation2] sm:$0xff]  ;;  %v58_v7 = vld [vmem:[#allocation5] sm:$0xff]  ;;  %s182_s1 = smov [#allocation7]  }
  0x26   :  { %v62_v1 = vand.u32 2147483647, %v57_v0  ;;  %v59_v9 = vmax.f32 %v57_v0, 0.0  ;;  %v60_v10 = vmul.f32 %v58_v7, %v57_v0  ;;  %s86_s4 = sshll.u32 %s182_s1, 4  ;;  %s87_s4 = int_to_ptr.vmem [resolvable:$true] %s86_s4 }
  0x27   :  { %s152_s5 = scalar_lea.vmem %s87_s4, 128  ;;  %p157_p3 = scmp.lt.s32.totalorder %s87_s4, %s87_s4 }
  0x28   :  { %v63_v2 = vsub.f32 0.0, %v62_v1  ;;  %v61_v14 = vsub.f32 %v59_v9, %v60_v10  ;;  %p153_p2 = scmp.ne.s32.totalorder %s87_s4, %s152_s5  ;;  %p158_p4 = scmp.lt.s32.totalorder %s152_s5, %s152_s5 }
  0x2a   :  { %v64_v3 = vmul.f32 1.442695, %v63_v2  ;;  %p159_p5 = por %p158_p4, %p157_p3 }
  0x2c   :  { %104 = vpow2.f32 %v64_v3  ;;  %p160_p6 = pnand %p159_p5, %p153_p2 }
  0x36   :  { %v105_v4 = vpop.eup %104 }
  0x37   :  { %v66_v5 = vadd.f32 1.0, %v105_v4  ;;  %v69_v6 = vmul.f32 -0.5, %v105_v4  ;;  %v72_v11 = vand.u32 2147483647, %v105_v4 }
  0x39   :  { %106 = vlog2.f32 %v66_v5  ;;  %v70_v8 = vadd.f32 1.0, %v69_v6  ;;  %vm73_vm0 = vcmp.lt.f32.partialorder %v72_v11, 0.0004427343 }
  0x3b   :  { %v71_v12 = vmul.f32 %v105_v4, %v70_v8 }
  0x43   :  { %v107_v13 = vpop.eup %106 }
  0x44   :  { %v68_v15 = vmul.f32 0.6931472, %v107_v13 }
  0x46   :  { %v74_v16 = vsel %vm73_vm0, %v71_v12, %v68_v15 }
  0x47   :  { %v75_v17 = vadd.f32 %v74_v16, %v61_v14 }
  0x49   :  { %79 = vst [vmem:[#allocation7] sm:$0xff] %v75_v17 }
  0x4a   :  { %163 = shalt.err (!%p160_p6)
}
  0x4b   :  { %s164_s8 = scalar_lea.hbm %s236_s2, 128 }
  0x4c   :  { %p165_p7 = scmp.ne.s32.totalorder %s236_s2, %s164_s8  ;;  %p168_p8 = scmp.lt.u32.totalorder %s164_s8, %s236_s2 }
  0x4e   :  { %p170_p9 = pnand %p168_p8, %p165_p7 }
  0x50   :  { %173 = shalt.err (!%p170_p9)
}
  0x51   :  { %89 = dma.vmem_to_hbm [thread:$0]  %s87_s4, 128, %s236_s2, [#allocation4]  }
  0x52   :  { %178 = dma.done.wait [#allocation4], 128  }
  0x53   :  { %179 = vsyncadd [#allocation4], 4294967168 }
  0x54   :  { %93 = vsyncpa [#allocation3], 1 }
  0x55   :  { %94 = vsyncpa [#allocation6], 1 }
  0x56   :  { %95 = vsyncpa [#allocation4], 1 }

</bundles_post_ra>
